<compile_context>
chip_gen: v7x
topology: tpu7x:2x2x1
jax: 0.10.0
libtpu: 0.0.40
codegen_flags: <defaults>
</compile_context>

<pallas_src>
import functools

import jax
import jax.numpy as jnp
from jax.experimental import pallas as pl
from jax.experimental.pallas import tpu as pltpu


def _round_up(x, m):
    return ((x + m - 1) // m) * m


def _vq_tile_kernel(z_ref, emb_ref, e2h_ref, q_ref, idx_ref, cnt_ref, sse_ref,
                    *, n_valid, tile_rows):
    z = z_ref[...]                                   # [TM, D] f32 (row tile)
    e = emb_ref[...]                                 # [K,  D] f32 (resident)
    e2h = e2h_ref[...]                               # [1,  K] f32 = 0.5*|E|^2
    tm = z.shape[0]
    k = e.shape[0]

    # score s = z.E^T - 0.5*|E|^2 ;  argmax_k s == argmin_k |z - e_k|^2
    cross = jax.lax.dot_general(z, e, (((1,), (1,)), ((), ())),
                                preferred_element_type=jnp.float32)   # [TM, K]
    s = cross - e2h                                                   # [TM, K]

    # argmax with first-occurrence tie-break (== torch.argmin on distances)
    s_max = jnp.max(s, axis=1, keepdims=True)                         # [TM, 1]
    iota_k = jax.lax.broadcasted_iota(jnp.int32, s.shape, 1)          # [TM, K]
    idx = jnp.min(jnp.where(s >= s_max, iota_k, k), axis=1,
                  keepdims=True)                                      # [TM, 1]
    onehot = (iota_k == idx).astype(jnp.float32)                      # [TM, K]

    # codebook lookup on the MXU (exact: one-hot row picks one codebook row)
    q = jnp.dot(onehot, e, preferred_element_type=jnp.float32)        # [TM, D]

    # global row-validity mask (padded rows contribute nothing to partials)
    row0 = pl.program_id(0) * tile_rows
    rows = row0 + jax.lax.broadcasted_iota(jnp.int32, (tm, 1), 0)
    valid = (rows < n_valid).astype(jnp.float32)                      # [TM, 1]

    # per-row squared quantization error via |z - e*|^2 = |z|^2 - 2*max(s)
    z2 = jnp.sum(z * z, axis=1, keepdims=True)                        # [TM, 1]
    md = jnp.maximum(z2 - 2.0 * s_max, 0.0)                           # [TM, 1]

    q_ref[...] = q
    idx_ref[...] = idx
    cnt_ref[...] = jnp.sum(onehot * valid, axis=0, keepdims=True).reshape(1, 1, k)
    sse_ref[...] = jnp.sum(md * valid).reshape(1, 1, 1)


def vector_quantizer(inputs, embedding, commitment_cost=0.6, *, tile_rows=512):
    """inputs: [..., D] float, embedding: [K, D] float.

    Returns (loss, quantized, perplexity, encodings) like the PyTorch module.
    """
    K, D = embedding.shape
    flat = inputs.reshape(-1, D).astype(jnp.float32)
    N = flat.shape[0]

    # row tile: multiple of 8 sublanes, clamped to the (padded) row count
    tm = min(int(tile_rows), _round_up(max(N, 1), 8))
    tm = _round_up(tm, 8)
    n_pad = _round_up(N, tm)
    n_tiles = n_pad // tm

    emb = embedding.astype(jnp.float32)
    e2h = 0.5 * jnp.sum(emb * emb, axis=1)[None, :]                   # [1, K]

    if n_pad != N:   # small row pad (< TM rows); padded rows masked in-kernel
        flat_in = jnp.zeros((n_pad, D), jnp.float32).at[:N].set(flat)
    else:
        flat_in = flat

    kern = functools.partial(_vq_tile_kernel, n_valid=N, tile_rows=tm)

    flops = 4 * n_pad * K * D                       # two [TM,K]x[K,D]-ish matmuls
    bytes_accessed = 4 * (n_pad * D * 2 + K * D + K + n_pad + n_tiles * (K + 1))
    cost = pl.CostEstimate(flops=int(flops), transcendentals=0,
                           bytes_accessed=int(bytes_accessed))

    q_pad, idx_pad, cnt_parts, sse_parts = pl.pallas_call(
        kern,
        grid=(n_tiles,),
        out_shape=(
            jax.ShapeDtypeStruct((n_pad, D), jnp.float32),     # quantized rows
            jax.ShapeDtypeStruct((n_pad, 1), jnp.int32),       # argmin indices
            jax.ShapeDtypeStruct((n_tiles, 1, K), jnp.float32),  # per-tile counts
            jax.ShapeDtypeStruct((n_tiles, 1, 1), jnp.float32),  # per-tile SSE
        ),
        in_specs=[
            pl.BlockSpec((tm, D), lambda i: (i, 0)),           # streamed rows
            pl.BlockSpec((K, D), lambda i: (0, 0)),            # resident codebook
            pl.BlockSpec((1, K), lambda i: (0, 0)),            # resident 0.5*|E|^2
        ],
        out_specs=(
            pl.BlockSpec((tm, D), lambda i: (i, 0)),
            pl.BlockSpec((tm, 1), lambda i: (i, 0)),
            pl.BlockSpec((1, 1, K), lambda i: (i, 0, 0)),
            pl.BlockSpec((1, 1, 1), lambda i: (i, 0, 0)),
        ),
        compiler_params=pltpu.CompilerParams(
            dimension_semantics=("parallel",),
            vmem_limit_bytes=32 * 1024 * 1024,
        ),
        cost_estimate=cost,
    )(flat_in, emb, e2h)

    # tiny XLA epilogue: reductions over per-tile partials + API-shaped outputs
    quantized = q_pad[:N].reshape(inputs.shape)
    idx = idx_pad[:N, 0]
    encodings = jax.nn.one_hot(idx, K, dtype=jnp.float32)
    avg_probs = jnp.sum(cnt_parts, axis=(0, 1)) / float(N)            # [K]
    perplexity = jnp.exp(-jnp.sum(avg_probs * jnp.log(avg_probs + 1e-10)))
    mse = jnp.sum(sse_parts) / float(N * D)
    loss = (1.0 + commitment_cost) * mse
    return loss, quantized, perplexity, encodings


if __name__ == "__main__":
    NUM_EMBEDDINGS = 512
    EMBEDDING_DIM = 20
    COMMITMENT_COST = 0.6

    key = jax.random.PRNGKey(0)
    k_emb, k_x1, k_x2 = jax.random.split(key, 3)
    # nn.Embedding weight init uniform(-1/K, 1/K), as in the PyTorch module
    embedding = jax.random.uniform(
        k_emb, (NUM_EMBEDDINGS, EMBEDDING_DIM), jnp.float32,
        -1.0 / NUM_EMBEDDINGS, 1.0 / NUM_EMBEDDINGS)

    def check(x, outs):
        loss, quantized, perplexity, encodings = outs
        flat = x.reshape(-1, EMBEDDING_DIM)
        n = flat.shape[0]

        # shapes / finiteness
        assert quantized.shape == x.shape and quantized.dtype == jnp.float32
        assert encodings.shape == (n, NUM_EMBEDDINGS)
        assert loss.shape == () and perplexity.shape == ()
        assert bool(jnp.all(jnp.isfinite(quantized)))
        assert bool(jnp.isfinite(loss)) and bool(jnp.isfinite(perplexity))

        # encodings are valid one-hot rows
        assert bool(jnp.all((encodings == 0.0) | (encodings == 1.0)))
        assert bool(jnp.allclose(jnp.sum(encodings, axis=1), 1.0))

        # chosen codes are (numerically) optimal w.r.t. the reference distances
        idx = jnp.argmax(encodings, axis=1)
        dist = (jnp.sum(flat ** 2, axis=1, keepdims=True)
                + jnp.sum(embedding ** 2, axis=1)
                - 2.0 * flat @ embedding.T)
        chosen_d = jnp.take_along_axis(dist, idx[:, None], axis=1)[:, 0]
        assert bool(jnp.all(chosen_d <= jnp.min(dist, axis=1) + 1e-4)), "argmin"

        # quantized rows are exactly the selected codebook rows
        assert bool(jnp.allclose(quantized.reshape(-1, EMBEDDING_DIM),
                                 embedding[idx], atol=1e-6)), "quantized"

        # loss matches the reference formula on the kernel's assignment,
        # and the fully independent torch-style reference loss
        q_flat = quantized.reshape(-1, EMBEDDING_DIM)
        loss_direct = (1.0 + COMMITMENT_COST) * jnp.mean((q_flat - flat) ** 2)
        assert bool(jnp.allclose(loss, loss_direct, rtol=1e-4, atol=1e-6)), "loss"
        ref_idx = jnp.argmin(dist, axis=1)
        ref_q = embedding[ref_idx]
        ref_loss = (1.0 + COMMITMENT_COST) * jnp.mean((ref_q - flat) ** 2)
        assert bool(jnp.allclose(loss, ref_loss, rtol=1e-4, atol=1e-6)), "ref loss"

        # perplexity matches the reference formula on the kernel's encodings
        p = jnp.mean(encodings, axis=0)
        perp_direct = jnp.exp(-jnp.sum(p * jnp.log(p + 1e-10)))
        assert bool(jnp.allclose(perplexity, perp_direct,
                                 rtol=1e-5, atol=1e-5)), "perplexity"

    # case 1: small input (single row tile)
    x1 = jax.random.normal(k_x1, (2, 4, EMBEDDING_DIM), jnp.float32)
    fwd1 = jax.jit(functools.partial(vector_quantizer,
                                     commitment_cost=COMMITMENT_COST))
    out1 = fwd1(x1, embedding)
    jax.block_until_ready(out1)
    check(x1, out1)

    # case 2: row count not a tile multiple -> multi-tile grid + row masking
    x2 = jax.random.normal(k_x2, (3, 37, EMBEDDING_DIM), jnp.float32)   # N=111
    fwd2 = jax.jit(functools.partial(vector_quantizer,
                                     commitment_cost=COMMITMENT_COST,
                                     tile_rows=32))
    out2 = fwd2(x2, embedding)
    jax.block_until_ready(out2)
    check(x2, out2)

    print("KERNEL_OK")
</pallas_src>

<mosaic_0001>
module attributes {stable_mosaic.version = 11 : i64} {
  func.func @_vq_tile_kernel(%arg0: i32, %arg1: memref<8x20xf32, #tpu.memory_space<vmem>>, %arg2: memref<512x20xf32, #tpu.memory_space<vmem>>, %arg3: memref<1x512xf32, #tpu.memory_space<vmem>>, %arg4: memref<8x20xf32, #tpu.memory_space<vmem>>, %arg5: memref<8x1xi32, #tpu.memory_space<vmem>>, %arg6: memref<1x1x512xf32, #tpu.memory_space<vmem>>, %arg7: memref<1x1x1xf32, #tpu.memory_space<vmem>>) attributes {dimension_semantics = [#tpu.dimension_semantics<parallel>], iteration_bounds = array<i64: 1>, scalar_prefetch = 0 : i64, scratch_operands = 0 : i64, tpu.core_type = #tpu.core_type<tc>, window_params = [{transform_indices = @transform_0, window_bounds = array<i64: 8, 20>}, {pipeline_mode = #tpu.pipeline_mode<synchronous>, transform_indices = @transform_1, window_bounds = array<i64: 512, 20>}, {pipeline_mode = #tpu.pipeline_mode<synchronous>, transform_indices = @transform_2, window_bounds = array<i64: 1, 512>}, {transform_indices = @transform_3, window_bounds = array<i64: 8, 20>}, {transform_indices = @transform_4, window_bounds = array<i64: 8, 1>}, {transform_indices = @transform_5, window_bounds = array<i64: 1, 1, 512>}, {transform_indices = @transform_6, window_bounds = array<i64: 1, 1, 1>}]} {
    %c0 = arith.constant 0 : index
    %c0_0 = arith.constant 0 : index
    %0 = vector.load %arg1[%c0, %c0_0] : memref<8x20xf32, #tpu.memory_space<vmem>>, vector<8x20xf32>
    %c0_1 = arith.constant 0 : index
    %c0_2 = arith.constant 0 : index
    %1 = vector.load %arg2[%c0_1, %c0_2] : memref<512x20xf32, #tpu.memory_space<vmem>>, vector<512x20xf32>
    %c0_3 = arith.constant 0 : index
    %c0_4 = arith.constant 0 : index
    %2 = vector.load %arg3[%c0_3, %c0_4] : memref<1x512xf32, #tpu.memory_space<vmem>>, vector<1x512xf32>
    %cst = arith.constant dense<0.000000e+00> : vector<8x512xf32>
    %3 = tpu.matmul %0, %1, %cst {dimension_numbers = #tpu.dot_dimension_numbers<[1], [1], [0], [0], [0, 0, 1, 0], [], []>} : vector<8x20xf32>, vector<512x20xf32>, vector<8x512xf32> -> vector<8x512xf32>
    %4 = vector.broadcast %2 : vector<1x512xf32> to vector<8x512xf32>
    %5 = arith.subf %3, %4 : vector<8x512xf32>
    %cst_5 = arith.constant dense<0xFF800000> : vector<8xf32>
    %6 = vector.multi_reduction <maximumf>, %5, %cst_5 [1] : vector<8x512xf32> to vector<8xf32>
    %7 = vector.shape_cast %6 : vector<8xf32> to vector<8x1xf32>
    %8 = tpu.iota {dimensions = array<i32: 1>} : vector<8x512xi32>
    %9 = vector.broadcast %7 : vector<8x1xf32> to vector<8x512xf32>
    %10 = arith.cmpf oge, %5, %9 : vector<8x512xf32>
    %c512_i32 = arith.constant 512 : i32
    %11 = vector.broadcast %c512_i32 : i32 to vector<8x512xi32>
    %12 = arith.select %10, %8, %11 : vector<8x512xi1>, vector<8x512xi32>
    %cst_6 = arith.constant dense<2147483647> : vector<8xi32>
    %13 = vector.multi_reduction <minsi>, %12, %cst_6 [1] : vector<8x512xi32> to vector<8xi32>
    %14 = vector.shape_cast %13 : vector<8xi32> to vector<8x1xi32>
    %15 = vector.broadcast %14 : vector<8x1xi32> to vector<8x512xi32>
    %16 = arith.cmpi eq, %8, %15 : vector<8x512xi32>
    %17 = arith.extui %16 : vector<8x512xi1> to vector<8x512xi32>
    %18 = arith.sitofp %17 : vector<8x512xi32> to vector<8x512xf32>
    %cst_7 = arith.constant dense<0.000000e+00> : vector<8x20xf32>
    %19 = tpu.matmul %18, %1, %cst_7 {dimension_numbers = #tpu.dot_dimension_numbers<[1], [0], [0], [1], [0, 0, 1, 1], [], []>} : vector<8x512xf32>, vector<512x20xf32>, vector<8x20xf32> -> vector<8x20xf32>
    %c8_i32 = arith.constant 8 : i32
    %20 = arith.muli %arg0, %c8_i32 : i32
    %21 = tpu.iota {dimensions = array<i32: 0>} : vector<8x1xi32>
    %22 = vector.broadcast %20 : i32 to vector<8x1xi32>
    %23 = arith.addi %22, %21 : vector<8x1xi32>
    %c8_i32_8 = arith.constant 8 : i32
    %24 = vector.broadcast %c8_i32_8 : i32 to vector<8x1xi32>
    %25 = arith.cmpi slt, %23, %24 : vector<8x1xi32>
    %26 = arith.extui %25 : vector<8x1xi1> to vector<8x1xi32>
    %27 = arith.sitofp %26 : vector<8x1xi32> to vector<8x1xf32>
    %28 = arith.mulf %0, %0 : vector<8x20xf32>
    %cst_9 = arith.constant dense<0.000000e+00> : vector<8xf32>
    %29 = vector.multi_reduction <add>, %28, %cst_9 [1] : vector<8x20xf32> to vector<8xf32>
    %30 = vector.shape_cast %29 : vector<8xf32> to vector<8x1xf32>
    %cst_10 = arith.constant 2.000000e+00 : f32
    %31 = vector.broadcast %cst_10 : f32 to vector<8x1xf32>
    %32 = arith.mulf %31, %7 : vector<8x1xf32>
    %33 = arith.subf %30, %32 : vector<8x1xf32>
    %cst_11 = arith.constant 0.000000e+00 : f32
    %34 = vector.broadcast %cst_11 : f32 to vector<8x1xf32>
    %35 = arith.maximumf %33, %34 : vector<8x1xf32>
    %c0_12 = arith.constant 0 : index
    %c0_13 = arith.constant 0 : index
    %36 = vector.load %arg4[%c0_12, %c0_13] : memref<8x20xf32, #tpu.memory_space<vmem>>, vector<8x20xf32>
    tpu.vector_store %arg4[%c0_12, %c0_13], %19 {strides = array<i32>} : memref<8x20xf32, #tpu.memory_space<vmem>>, vector<8x20xf32>,
    %c0_14 = arith.constant 0 : index
    %c0_15 = arith.constant 0 : index
    %37 = vector.load %arg5[%c0_14, %c0_15] : memref<8x1xi32, #tpu.memory_space<vmem>>, vector<8x1xi32>
    tpu.vector_store %arg5[%c0_14, %c0_15], %14 {strides = array<i32>} : memref<8x1xi32, #tpu.memory_space<vmem>>, vector<8x1xi32>,
    %38 = vector.broadcast %27 : vector<8x1xf32> to vector<8x512xf32>
    %39 = arith.mulf %18, %38 : vector<8x512xf32>
    %cst_16 = arith.constant dense<0.000000e+00> : vector<512xf32>
    %40 = vector.multi_reduction <add>, %39, %cst_16 [0] : vector<8x512xf32> to vector<512xf32>
    %41 = vector.shape_cast %40 : vector<512xf32> to vector<1x512xf32>
    %42 = vector.shape_cast %41 : vector<1x512xf32> to vector<1x1x512xf32>
    %c0_17 = arith.constant 0 : index
    %c0_18 = arith.constant 0 : index
    %c0_19 = arith.constant 0 : index
    %43 = vector.load %arg6[%c0_17, %c0_18, %c0_19] : memref<1x1x512xf32, #tpu.memory_space<vmem>>, vector<1x1x512xf32>
    tpu.vector_store %arg6[%c0_17, %c0_18, %c0_19], %42 {strides = array<i32>} : memref<1x1x512xf32, #tpu.memory_space<vmem>>, vector<1x1x512xf32>,
    %44 = arith.mulf %35, %27 : vector<8x1xf32>
    %45 = vector.shape_cast %44 : vector<8x1xf32> to vector<1x8x1xf32>
    %cst_20 = arith.constant dense<0.000000e+00> : vector<1xf32>
    %46 = vector.multi_reduction <add>, %45, %cst_20 [1, 2] : vector<1x8x1xf32> to vector<1xf32>
    %47 = vector.shape_cast %46 : vector<1xf32> to vector<1x1x1xf32>
    %48 = vector.extract %47[0, 0, 0] : f32 from vector<1x1x1xf32>
    %49 = vector.broadcast %48 : f32 to vector<1x1x1xf32>
    %c0_21 = arith.constant 0 : index
    %c0_22 = arith.constant 0 : index
    %c0_23 = arith.constant 0 : index
    %50 = vector.load %arg7[%c0_21, %c0_22, %c0_23] : memref<1x1x1xf32, #tpu.memory_space<vmem>>, vector<1x1x1xf32>
    tpu.vector_store %arg7[%c0_21, %c0_22, %c0_23], %49 {strides = array<i32>} : memref<1x1x1xf32, #tpu.memory_space<vmem>>, vector<1x1x1xf32>,
    return
  }
  func.func @transform_0(%arg0: i32) -> (i32, i32) {
    %c0_i32 = arith.constant 0 : i32
    %c0_i32_0 = arith.constant 0 : i32
    return %arg0, %c0_i32 : i32, i32
  }
  func.func @transform_1(%arg0: i32) -> (i32, i32) {
    %c0_i32 = arith.constant 0 : i32
    %c0_i32_0 = arith.constant 0 : i32
    %c0_i32_1 = arith.constant 0 : i32
    return %c0_i32, %c0_i32_0 : i32, i32
  }
  func.func @transform_2(%arg0: i32) -> (i32, i32) {
    %c0_i32 = arith.constant 0 : i32
    %c0_i32_0 = arith.constant 0 : i32
    %c0_i32_1 = arith.constant 0 : i32
    return %c0_i32, %c0_i32_0 : i32, i32
  }
  func.func @transform_3(%arg0: i32) -> (i32, i32) {
    %c0_i32 = arith.constant 0 : i32
    %c0_i32_0 = arith.constant 0 : i32
    return %arg0, %c0_i32 : i32, i32
  }
  func.func @transform_4(%arg0: i32) -> (i32, i32) {
    %c0_i32 = arith.constant 0 : i32
    %c0_i32_0 = arith.constant 0 : i32
    return %arg0, %c0_i32 : i32, i32
  }
  func.func @transform_5(%arg0: i32) -> (i32, i32, i32) {
    %c0_i32 = arith.constant 0 : i32
    %c0_i32_0 = arith.constant 0 : i32
    %c0_i32_1 = arith.constant 0 : i32
    return %arg0, %c0_i32, %c0_i32_0 : i32, i32, i32
  }
  func.func @transform_6(%arg0: i32) -> (i32, i32, i32) {
    %c0_i32 = arith.constant 0 : i32
    %c0_i32_0 = arith.constant 0 : i32
    %c0_i32_1 = arith.constant 0 : i32
    return %arg0, %c0_i32, %c0_i32_0 : i32, i32, i32
  }
}

</mosaic_0001>

<bundles_post_ra>
// kernel: vector_quantizer.1
= control target key start
LH: loop header
LB: loop body
LE: loop exit
PB: predicated region body
PF: predicated region fallthrough
CT: control target
= control target key end

     0   :  { %12 = vsyncpa [#allocation3], 0  ;;  %vm86_vm0 = vcmask 162816   ;;  %s1648_s0 = inlined_call_operand.vmem [shape: f32[8,20], index: 0, kind: input, shape index: {}]   ;;  %s1649_s1 = inlined_call_operand.vmem [shape: f32[512,20], index: 1, kind: input, shape index: {}]   ;;  %s1650_s2 = inlined_call_operand.vmem [shape: f32[1,512], index: 2, kind: input, shape index: {}]   ;;  %s1651_s3 = inlined_call_operand.hbm [shape: f32[8,20], index: 3, kind: output, shape index: {0}]   ;;  %s1652_s4 = inlined_call_operand.vmem [shape: s32[8,1], index: 4, kind: output, shape index: {1}]   ;;  %s1653_s5 = inlined_call_operand.vmem [shape: f32[1,1,512], index: 5, kind: output, shape index: {2}]   ;;  %s1654_s6 = inlined_call_operand.hbm [shape: f32[1,1,1], index: 6, kind: output, shape index: {3}]  }
   0x1   :  { %v37_v0 = vld [vmem:[%s1649_s1 + $0x80] sm:$0xff]  ;;  %v38_v1 = vld [vmem:[%s1649_s1 + $0x88] sm:$0xff]  ;;  %vm1249_vm1 = vmpackc.low %vm86_vm0, %vm86_vm0 }
   0x2   :  { %v69_v2 = vld [vmem:[%s1649_s1 + $0x180] sm:$0xff]  ;;  %v1245_v3 = vpack.c.bf16 %v38_v1, %v37_v0  ;;  %v70_v5 = vld [vmem:[%s1649_s1 + $0x188] sm:$0xff]  ;;  %v39_v13 = vld [vmem:[%s1649_s1 + $0x90] sm:$0xff] }
   0x3   :  { %v21_v6 = vld [vmem:[%s1649_s1] sm:$0xff]  ;;  %v1259_v7 = vpack.c.bf16 %v70_v5, %v69_v2  ;;  %v22_v8 = vld [vmem:[%s1649_s1 + $0x8] sm:$0xff]  ;;  %v40_v14 = vld [vmem:[%s1649_s1 + $0x98] sm:$0xff] }
   0x4   :  { %v53_v9 = vld [vmem:[%s1649_s1 + $0x100] sm:$0xff]  ;;  %v54_v10 = vld [vmem:[%s1649_s1 + $0x108] sm:$0xff]  ;;  %983 = vmatprep.subr.msk.bf16.mxu0 %vm1249_vm1, %v1245_v3  ;;  %v1273_v11 = vpack.c.bf16 %v22_v8, %v21_v6  ;;  %v71_v15 = vld [vmem:[%s1649_s1 + $0x190] sm:$0xff]  ;;  %v1289_v16 = vpack.c.bf16 %v40_v14, %v39_v13 }
   0x5   :  { %v1275_v12 = vpack.c.bf16 %v54_v10, %v53_v9  ;;  %1031 = vmatprep.subr.msk.bf16.mxu1 %vm1249_vm1, %v1259_v7  ;;  %v72_v17 = vld [vmem:[%s1649_s1 + $0x198] sm:$0xff]  ;;  %v23_v19 = vld [vmem:[%s1649_s1 + $0x10] sm:$0xff]  ;;  %v41_v23 = vld [vmem:[%s1649_s1 + $0xa0] sm:$0xff] }
   0x6   :  { %986 = vmatpush3.bf16.xpose.msk.msra.mxu0 %vm1249_vm1, %v1273_v11  ;;  %v1300_v18 = vpack.c.bf16 %v72_v17, %v71_v15  ;;  %v24_v20 = vld [vmem:[%s1649_s1 + $0x18] sm:$0xff]  ;;  %v55_v21 = vld [vmem:[%s1649_s1 + $0x110] sm:$0xff]  ;;  %v42_v24 = vld [vmem:[%s1649_s1 + $0xa8] sm:$0xff] }
   0x7   :  { %1034 = vmatpush3.bf16.xpose.msk.msra.mxu1 %vm1249_vm1, %v1275_v12  ;;  %989 = vmatprep.subr.msk.bf16.mxu0 %vm1249_vm1, %v1289_v16  ;;  %v56_v22 = vld [vmem:[%s1649_s1 + $0x118] sm:$0xff]  ;;  %v73_v25 = vld [vmem:[%s1649_s1 + $0x1a0] sm:$0xff]  ;;  %v74_v26 = vld [vmem:[%s1649_s1 + $0x1a8] sm:$0xff]  ;;  %v1332_v27 = vpack.c.bf16 %v24_v20, %v23_v19  ;;  %v1336_v29 = vpack.c.bf16 %v42_v24, %v41_v23 }
   0x8   :  { %1037 = vmatprep.subr.msk.bf16.mxu1 %vm1249_vm1, %v1300_v18  ;;  %v1334_v28 = vpack.c.bf16 %v56_v22, %v55_v21  ;;  %v1338_v30 = vpack.c.bf16 %v74_v26, %v73_v25  ;;  %v25_v31 = vld [vmem:[%s1649_s1 + $0x20] sm:$0xff]  ;;  %v26_v32 = vld [vmem:[%s1649_s1 + $0x28] sm:$0xff]  ;;  %v43_v35 = vld [vmem:[%s1649_s1 + $0xb0] sm:$0xff] }
   0x9   :  { %v57_v33 = vld [vmem:[%s1649_s1 + $0x120] sm:$0xff]  ;;  %v58_v34 = vld [vmem:[%s1649_s1 + $0x128] sm:$0xff]  ;;  %v44_v36 = vld [vmem:[%s1649_s1 + $0xb8] sm:$0xff]  ;;  %v1376_v39 = vpack.c.bf16 %v26_v32, %v25_v31 }
   0xa   :  { %v75_v37 = vld [vmem:[%s1649_s1 + $0x1b0] sm:$0xff]  ;;  %v76_v38 = vld [vmem:[%s1649_s1 + $0x1b8] sm:$0xff]  ;;  %v1378_v40 = vpack.c.bf16 %v58_v34, %v57_v33  ;;  %v1380_v41 = vpack.c.bf16 %v44_v36, %v43_v35  ;;  %v1402_v46 = vld [vmem:[%s1648_s0] sm:$0xff] }
   0xb   :  { %v1382_v42 = vpack.c.bf16 %v76_v38, %v75_v37  ;;  %v27_v43 = vld [vmem:[%s1649_s1 + $0x30] sm:$0xff]  ;;  %v28_v44 = vld [vmem:[%s1649_s1 + $0x38] sm:$0xff]  ;;  %v45_v48 = vld [vmem:[%s1649_s1 + $0xc0] sm:$0xff] }
   0xc   :  { %v59_v45 = vld [vmem:[%s1649_s1 + $0x130] sm:$0xff]  ;;  %v60_v47 = vld [vmem:[%s1649_s1 + $0x138] sm:$0xff] }
   0xe   :  { %992 = vmatpush3.bf16.xpose.msk.msra.mxu0 %vm1249_vm1, %v1332_v27 }
   0xf   :  { %1040 = vmatpush3.bf16.xpose.msk.msra.mxu1 %vm1249_vm1, %v1334_v28  ;;  %995 = vmatprep.subr.msk.bf16.mxu0 %vm1249_vm1, %v1336_v29 }
  0x10   :  { %1043 = vmatprep.subr.msk.bf16.mxu1 %vm1249_vm1, %v1338_v30 }
  0x16   :  { %998 = vmatpush3.bf16.xpose.msk.msra.mxu0 %vm1249_vm1, %v1376_v39 }
  0x17   :  { %1046 = vmatpush3.bf16.xpose.msk.msra.mxu1 %vm1249_vm1, %v1378_v40  ;;  %1001 = vmatprep.subr.msk.bf16.mxu0 %vm1249_vm1, %v1380_v41 }
  0x18   :  { %1049 = vmatprep.subr.msk.bf16.mxu1 %vm1249_vm1, %v1382_v42 }
  0x19   :  { %13 = vsyncpa [#allocation5], 0  ;;  %v46_v49 = vld [vmem:[%s1649_s1 + $0xc8] sm:$0xff]  ;;  %v77_v50 = vld [vmem:[%s1649_s1 + $0x1c0] sm:$0xff]  ;;  %875 = vmatprep.mubr.msk.f32.mxu0 %vm86_vm0, %v1402_v46  ;;  %909 = vmatprep.mubr.msk.f32.mxu1 %vm86_vm0, %v1402_v46  ;;  %v1429_v52 = vpack.c.bf16 %v28_v44, %v27_v43  ;;  %v1431_v53 = vpack.c.bf16 %v60_v47, %v59_v45  ;;  %vm655_vm10 = vcmask 7168   ;;  %s1199_s7 = smov [#allocation4]  }
  0x1a   :  { %v78_v51 = vld [vmem:[%s1649_s1 + $0x1c8] sm:$0xff]  ;;  %v1433_v54 = vpack.c.bf16 %v46_v49, %v45_v48  ;;  %v29_v56 = vld [vmem:[%s1649_s1 + $0x40] sm:$0xff]  ;;  %v47_v60 = vld [vmem:[%s1649_s1 + $0xd0] sm:$0xff]  ;;  %s753_s8 = sshll.u32 %s1199_s7, 4  ;;  %s754_s8 = int_to_ptr.vmem [resolvable:$true] %s753_s8 }
  0x1b   :  { %v1435_v55 = vpack.c.bf16 %v78_v51, %v77_v50  ;;  %v30_v57 = vld [vmem:[%s1649_s1 + $0x48] sm:$0xff]  ;;  %v61_v58 = vld [vmem:[%s1649_s1 + $0x140] sm:$0xff]  ;;  %v48_v61 = vld [vmem:[%s1649_s1 + $0xd8] sm:$0xff]  ;;  %s1148_s10 = scalar_lea.vmem %s754_s8, 16  ;;  %s1152_s11 = scalar_lea.vmem %s754_s8, 32 }
  0x1c   :  { %v62_v59 = vld [vmem:[%s1649_s1 + $0x148] sm:$0xff]  ;;  %v79_v62 = vld [vmem:[%s1649_s1 + $0x1d0] sm:$0xff]  ;;  %v80_v63 = vld [vmem:[%s1649_s1 + $0x1d8] sm:$0xff]  ;;  %v1473_v0 = vpack.c.bf16 %v30_v57, %v29_v56  ;;  %v1477_v2 = vpack.c.bf16 %v48_v61, %v47_v60  ;;  %p1149_p0 = scmp.ne.s32.totalorder %s754_s8, %s1148_s10  ;;  %p1153_p1 = scmp.lt.s32.totalorder %s754_s8, %s754_s8 }
  0x1d   :  { %v1475_v1 = vpack.c.bf16 %v62_v59, %v61_v58  ;;  %v1479_v5 = vpack.c.bf16 %v80_v63, %v79_v62  ;;  %v31_v6 = vld [vmem:[%s1649_s1 + $0x50] sm:$0xff]  ;;  %v32_v8 = vld [vmem:[%s1649_s1 + $0x58] sm:$0xff]  ;;  %v49_v13 = vld [vmem:[%s1649_s1 + $0xe0] sm:$0xff]  ;;  %p1154_p2 = scmp.lt.s32.totalorder %s1152_s11, %s1148_s10 }
  0x1e   :  { %1004 = vmatpush3.bf16.xpose.msk.msra.mxu0 %vm1249_vm1, %v1429_v52  ;;  %v63_v9 = vld [vmem:[%s1649_s1 + $0x150] sm:$0xff]  ;;  %v64_v10 = vld [vmem:[%s1649_s1 + $0x158] sm:$0xff]  ;;  %v50_v14 = vld [vmem:[%s1649_s1 + $0xe8] sm:$0xff]  ;;  %v1014_v19 = vpack.c.bf16 %v32_v8, %v31_v6 }
  0x1f   :  { %1052 = vmatpush3.bf16.xpose.msk.msra.mxu1 %vm1249_vm1, %v1431_v53  ;;  %1007 = vmatprep.subr.msk.bf16.mxu0 %vm1249_vm1, %v1433_v54  ;;  %v81_v15 = vld [vmem:[%s1649_s1 + $0x1e0] sm:$0xff]  ;;  %v82_v17 = vld [vmem:[%s1649_s1 + $0x1e8] sm:$0xff]  ;;  %v1062_v20 = vpack.c.bf16 %v64_v10, %v63_v9  ;;  %v1017_v21 = vpack.c.bf16 %v50_v14, %v49_v13  ;;  %v51_v31 = vld [vmem:[%s1649_s1 + $0xf0] sm:$0xff]  ;;  %p1155_p3 = por %p1154_p2, %p1153_p1 }
  0x20   :  { %1055 = vmatprep.subr.msk.bf16.mxu1 %vm1249_vm1, %v1435_v55  ;;  %v1065_v22 = vpack.c.bf16 %v82_v17, %v81_v15  ;;  %v33_v23 = vld [vmem:[%s1649_s1 + $0x60] sm:$0xff]  ;;  %v34_v24 = vld [vmem:[%s1649_s1 + $0x68] sm:$0xff]  ;;  %v52_v32 = vld [vmem:[%s1649_s1 + $0xf8] sm:$0xff]  ;;  %v647_v15 = vmul.f32 %v1402_v46, %v1402_v46 }
  0x21   :  { %v65_v25 = vld [vmem:[%s1649_s1 + $0x160] sm:$0xff]  ;;  %v66_v26 = vld [vmem:[%s1649_s1 + $0x168] sm:$0xff]  ;;  %v83_v33 = vld [vmem:[%s1649_s1 + $0x1f0] sm:$0xff]  ;;  %v1020_v35 = vpack.c.bf16 %v34_v24, %v33_v23  ;;  %v1023_v37 = vpack.c.bf16 %v52_v32, %v51_v31  ;;  %p1156_p4 = pnand %p1155_p3, %p1149_p0 }
  0x22   :  { %v84_v34 = vld [vmem:[%s1649_s1 + $0x1f8] sm:$0xff]  ;;  %v1068_v36 = vpack.c.bf16 %v66_v26, %v65_v25  ;;  %v35_v43 = vld [vmem:[%s1649_s1 + $0x70] sm:$0xff] }
  0x23   :  { %v1071_v38 = vpack.c.bf16 %v84_v34, %v83_v33  ;;  %v36_v44 = vld [vmem:[%s1649_s1 + $0x78] sm:$0xff]  ;;  %v67_v45 = vld [vmem:[%s1649_s1 + $0x170] sm:$0xff]  ;;  %v1197_v33 = vmov 1.0  }
  0x24   :  { %v68_v47 = vld [vmem:[%s1649_s1 + $0x178] sm:$0xff]  ;;  %v1026_v48 = vpack.c.bf16 %v36_v44, %v35_v43  ;;  %v1198_v44 = vmov 1966171168  }
  0x25   :  { %v1074_v49 = vpack.c.bf16 %v68_v47, %v67_v45  ;;  %v692_v45 = vunpack.c.l.s4 %v1198_v44 }
  0x26   :  { %1010 = vmatpush3.bf16.xpose.msk.msra.mxu0 %vm1249_vm1, %v1473_v0 }
  0x27   :  { %1058 = vmatpush3.bf16.xpose.msk.msra.mxu1 %vm1249_vm1, %v1475_v1  ;;  %1013 = vmatprep.subr.msk.bf16.mxu0 %vm1249_vm1, %v1477_v2 }
  0x28   :  { %1061 = vmatprep.subr.msk.bf16.mxu1 %vm1249_vm1, %v1479_v5 }
  0x2e   :  { %1016 = vmatpush3.bf16.xpose.msk.msra.mxu0 %vm1249_vm1, %v1014_v19 }
  0x2f   :  { %1064 = vmatpush3.bf16.xpose.msk.msra.mxu1 %vm1249_vm1, %v1062_v20  ;;  %1019 = vmatprep.subr.msk.bf16.mxu0 %vm1249_vm1, %v1017_v21 }
  0x30   :  { %1067 = vmatprep.subr.msk.bf16.mxu1 %vm1249_vm1, %v1065_v22 }
  0x36   :  { %1022 = vmatpush3.bf16.xpose.msk.msra.mxu0 %vm1249_vm1, %v1020_v35 }
  0x37   :  { %1070 = vmatpush3.bf16.xpose.msk.msra.mxu1 %vm1249_vm1, %v1068_v36  ;;  %1025 = vmatprep.subr.msk.bf16.mxu0 %vm1249_vm1, %v1023_v37 }
  0x38   :  { %1073 = vmatprep.subr.msk.bf16.mxu1 %vm1249_vm1, %v1071_v38 }
  0x3e   :  { %1028 = vmatpush3.bf16.xpose.msk.msra.mxu0 %vm1249_vm1, %v1026_v48 }
  0x3f   :  { %1076 = vmatpush3.bf16.xpose.msk.msra.mxu1 %vm1249_vm1, %v1074_v49  ;;  %1078 = vmatprep.subr.bf16.mxu0 %v1245_v3  ;;  %v425_v3 = vlaneseq  ;;  %vm731_vm1 = vcmask 0  }
  0x40   :  { %1110 = vmatprep.subr.bf16.mxu1 %v1259_v7 }
  0x41   :  { %v1600_v4 = vshrl.u32 %v425_v3, 7  ;;  %v455_v57 = vand.u32 127, %v425_v3  ;;  %vm716_vm15 = vcmp.lt.s32.totalorder %v425_v3, 512 }
  0x43   :  { %v427_v7 = vsub.s32 0, %v1600_v4  ;;  %v456_v58 = vadd.s32 128, %v455_v57  ;;  %v457_v59 = vadd.s32 256, %v455_v57  ;;  %v458_v60 = vadd.s32 384, %v455_v57 }
  0x45   :  { %876 = vmatmul.mubr.msk.f32.vlgmr.msra.gmra.mrb[0].mxu0 %vm86_vm0, %v1402_v46 }
  0x46   :  { %910 = vmatmul.mubr.msk.f32.vlgmr.msra.gmra.mrb[0].mxu1 %vm86_vm0, %v1402_v46  ;;  %1080 = vmatpush3.bf16.msra.mxu0 %v1273_v11  ;;  %v435_v11 = vsub.s32 2, %v1600_v4  ;;  %v1196_v46 = vmov 0.0  }
  0x47   :  { %1112 = vmatpush3.bf16.msra.mxu1 %v1275_v12  ;;  %1082 = vmatprep.subr.bf16.mxu0 %v1289_v16  ;;  %v85_v12 = vld [vmem:[%s1650_s2] sm:$0xf]  ;;  %v431_v16 = vsub.s32 1, %v1600_v4 }
  0x48   :  { %1114 = vmatprep.subr.bf16.mxu1 %v1300_v18  ;;  %v439_v18 = vsub.s32 3, %v1600_v4 }
  0x4a   :  { %1084 = vmatpush3.bf16.msra.mxu0 %v1332_v27  ;;  %v428_v27 = vrot.slane %v85_v12, %v427_v7 }
  0x4b   :  { %1116 = vmatpush3.bf16.msra.mxu1 %v1334_v28  ;;  %1086 = vmatprep.subr.bf16.mxu0 %v1336_v29  ;;  %v436_v28 = vrot.slane %v85_v12, %v435_v11  ;;  %v432_v29 = vrot.slane %v85_v12, %v431_v16 }
  0x4c   :  { %1118 = vmatprep.subr.bf16.mxu1 %v1338_v30  ;;  %v440_v30 = vrot.slane %v85_v12, %v439_v18 }
  0x4e   :  { %1088 = vmatpush3.bf16.msra.mxu0 %v1376_v39 }
  0x4f   :  { %1120 = vmatpush3.bf16.msra.mxu1 %v1378_v40  ;;  %1090 = vmatprep.subr.bf16.mxu0 %v1380_v41 }
  0x50   :  { %1122 = vmatprep.subr.bf16.mxu1 %v1382_v42 }
  0x52   :  { %1092 = vmatpush3.bf16.msra.mxu0 %v1429_v52 }
  0x53   :  { %1124 = vmatpush3.bf16.msra.mxu1 %v1431_v53  ;;  %1094 = vmatprep.subr.bf16.mxu0 %v1433_v54 }
  0x54   :  { %1126 = vmatprep.subr.bf16.mxu1 %v1435_v55 }
  0x56   :  { %1096 = vmatpush3.bf16.msra.mxu0 %v1473_v0 }
  0x57   :  { %1128 = vmatpush3.bf16.msra.mxu1 %v1475_v1  ;;  %1098 = vmatprep.subr.bf16.mxu0 %v1477_v2 }
  0x58   :  { %1130 = vmatprep.subr.bf16.mxu1 %v1479_v5 }
  0x5a   :  { %1100 = vmatpush3.bf16.msra.mxu0 %v1014_v19  ;;  %v648_v19 = vsel %vm86_vm0, %v647_v15, 0.0 }
  0x5b   :  { %1132 = vmatpush3.bf16.msra.mxu1 %v1062_v20  ;;  %1102 = vmatprep.subr.bf16.mxu0 %v1017_v21 }
  0x5c   :  { %1134 = vmatprep.subr.bf16.mxu1 %v1065_v22 }
  0x5e   :  { %1104 = vmatpush3.bf16.msra.mxu0 %v1020_v35 }
  0x5f   :  { %1136 = vmatpush3.bf16.msra.mxu1 %v1068_v36  ;;  %1106 = vmatprep.subr.bf16.mxu0 %v1023_v37 }
  0x60   :  { %1138 = vmatprep.subr.bf16.mxu1 %v1071_v38 }
  0x62   :  { %1108 = vmatpush3.bf16.msra.mxu0 %v1026_v48 }
  0x63   :  { %1140 = vmatpush3.bf16.msra.mxu1 %v1074_v49 }
 0x118   :  { %v348_v39 = vpop.f32.mrb[0].mxu0 }
 0x119   :  { %v419_v40 = vpop.f32.mrb[0].mxu1  ;;  %v445_v41 = vsub.f32 %v348_v39, %v428_v27  ;;  %v350_v50 = vpop.f32.mrb[1].mxu0 }
 0x11a   :  { %v447_v42 = vsub.f32 %v419_v40, %v436_v28  ;;  %v421_v51 = vpop.f32.mrb[1].mxu1  ;;  %v446_v52 = vsub.f32 %v350_v50, %v432_v29  ;;  %v693_v29 = vunpack.c.0.s8 %v692_v45 }
 0x11b   :  { %v448_v53 = vsub.f32 %v421_v51, %v440_v30 }
 0x11c   :  { %v449_v54 = vmax.f32 %v445_v41, %v446_v52 }
 0x11d   :  { %v450_v55 = vmax.f32 %v447_v42, %v448_v53 }
 0x11f   :  { %v451_v56 = vmax.f32 %v449_v54, %v450_v55 }
 0x121   :  { %452 = vmax.xlane.f32.xlu0 %v451_v56 }
 0x1ae   :  { %v453_v61 = vpop.xlane.xlu0 %452 }
 0x1af   :  { %vm459_vm2 = vcmp.ge.f32.partialorder %v445_v41, %v453_v61  ;;  %vm460_vm3 = vcmp.ge.f32.partialorder %v446_v52, %v453_v61  ;;  %vm461_vm4 = vcmp.ge.f32.partialorder %v447_v42, %v453_v61  ;;  %vm462_vm5 = vcmp.ge.f32.partialorder %v448_v53, %v453_v61 }
 0x1b0   :  { %v463_v62 = vsel %vm459_vm2, %v455_v57, 512  ;;  %v464_v63 = vsel %vm460_vm3, %v456_v58, 512  ;;  %v465_v0 = vsel %vm461_vm4, %v457_v59, 512  ;;  %v466_v1 = vsel %vm462_vm5, %v458_v60, 512 }
 0x1b1   :  { %vm467_vm6 = vcmp.lt.s32.totalorder %v463_v62, %v464_v63  ;;  %vm469_vm7 = vcmp.lt.s32.totalorder %v465_v0, %v466_v1  ;;  %v651_v25 = vmul.f32 2.0, %v453_v61  ;;  %v696_v53 = vsub.s32 %v693_v29, %v1600_v4 }
 0x1b2   :  { %v468_v2 = vsel %vm467_vm6, %v463_v62, %v464_v63  ;;  %v470_v5 = vsel %vm469_vm7, %v465_v0, %v466_v1 }
 0x1b3   :  { %vm471_vm8 = vcmp.lt.s32.totalorder %v468_v2, %v470_v5 }
 0x1b4   :  { %v472_v6 = vsel %vm471_vm8, %v468_v2, %v470_v5 }
 0x1b5   :  { %v474_v8 = vshra.s32 %v472_v6, 16  ;;  %v473_v10 = vand.u32 65535, %v472_v6 }
 0x1b7   :  { %v476_v9 = vcvt.s32.f32 %v474_v8  ;;  %v475_v14 = vcvt.s32.f32 %v473_v10 }
 0x1b9   :  { %477 = vmin.xlane.f32.xlu0 %v476_v9 }
 0x246   :  { %v478_v13 = vpop.xlane.xlu0 %477 }
 0x247   :  { %vm479_vm9 = vcmp.eq.f32.partialorder %v476_v9, %v478_v13  ;;  %v484_v20 = vcvt.f32.s32 %v478_v13 }
 0x248   :  { %v480_v17 = vsel %vm479_vm9, %v475_v14, inf }
 0x249   :  { %481 = vmin.xlane.f32.xlu1 %v480_v17  ;;  %v485_v22 = vshll.u32 %v484_v20, 16 }
 0x24d   :  { %649 = vadd.xlane.f32.xlu1 %v648_v19 }
 0x2d6   :  { %v482_v21 = vpop.xlane.xlu1 %481 }
 0x2d7   :  { %v483_v23 = vcvt.f32.s32 %v482_v21 }
 0x2d9   :  { %v486_v24 = vadd.s32 %v485_v22, %v483_v23 }
 0x2da   :  { %v650_v26 = vpop.xlane.xlu1 %649 }
 0x2db   :  { %v652_v31 = vsub.f32 %v650_v26, %v651_v25  ;;  %vm488_vm11 = vcmp.eq.s32.totalorder %v456_v58, %v486_v24  ;;  %vm490_vm12 = vcmp.eq.s32.totalorder %v458_v60, %v486_v24  ;;  %vm487_vm13 = vcmp.eq.s32.totalorder %v455_v57, %v486_v24  ;;  %656 = vst.msk [vmem:[%s1652_s4] sm:$0xff] %vm655_vm10, %v486_v24 }
 0x2dc   :  { %v836_v32 = vsel %vm488_vm11, 1.0, %v1196_v46  ;;  %839 = vmatprep.mubr.msk.f32.mxu0 %vm488_vm11, %v1197_v33  ;;  %v838_v34 = vsel %vm490_vm12, 1.0, %v1196_v46  ;;  %841 = vmatprep.mubr.msk.f32.mxu1 %vm490_vm12, %v1197_v33  ;;  %v835_v35 = vsel %vm487_vm13, 1.0, %v1196_v46  ;;  %vm489_vm14 = vcmp.eq.s32.totalorder %v457_v59, %v486_v24 }
 0x2dd   :  { %v653_v36 = vmax.f32 %v652_v31, 0.0  ;;  %v667_v37 = vrot.slane %v836_v32, 4  ;;  %v679_v38 = vrot.slane %v838_v34, 4  ;;  %840 = vmatmul.mubr.msk.f32.vlgmr.msra.gmra.mrb[2].mxu0 %vm487_vm13, %v1197_v33  ;;  %v661_v43 = vrot.slane %v835_v35, 4  ;;  %842 = vmatmul.mubr.msk.f32.vlgmr.msra.gmra.mrb[2].mxu1 %vm489_vm14, %v1197_v33 }
 0x2de   :  { %v837_v47 = vsel %vm489_vm14, 1.0, %v1196_v46 }
 0x2df   :  { %v668_v48 = vadd.f32 %v836_v32, %v667_v37  ;;  %v680_v49 = vadd.f32 %v838_v34, %v679_v38  ;;  %v662_v7 = vadd.f32 %v835_v35, %v661_v43  ;;  %v673_v11 = vrot.slane %v837_v47, 4 }
 0x2e0   :  { %v720_v12 = vsel %vm655_vm10, %v653_v36, 0.0 }
 0x2e1   :  { %v669_v16 = vrot.slane %v668_v48, 2  ;;  %v681_v18 = vrot.slane %v680_v49, 2  ;;  %v663_v27 = vrot.slane %v662_v7, 2  ;;  %v674_v28 = vadd.f32 %v837_v47, %v673_v11  ;;  %721 = vadd.xlane.f32.xlu0 %v720_v12 }
 0x2e3   :  { %v670_v30 = vadd.f32 %v669_v16, %v668_v48  ;;  %v682_v39 = vadd.f32 %v681_v18, %v680_v49  ;;  %v664_v40 = vadd.f32 %v663_v27, %v662_v7  ;;  %v675_v41 = vrot.slane %v674_v28, 2 }
 0x2e5   :  { %v671_v42 = vrot.slane %v670_v30, 1  ;;  %v683_v50 = vrot.slane %v682_v39, 1  ;;  %v665_v51 = vrot.slane %v664_v40, 1  ;;  %v676_v52 = vadd.f32 %v675_v41, %v674_v28 }
 0x2e7   :  { %v672_v54 = vadd.f32 %v671_v42, %v670_v30  ;;  %v684_v55 = vadd.f32 %v683_v50, %v682_v39  ;;  %v666_v56 = vadd.f32 %v665_v51, %v664_v40  ;;  %v677_v57 = vrot.slane %v676_v52, 1 }
 0x2e9   :  { %v689_v58 = vcombine.low %v666_v56, %v672_v54  ;;  %v678_v59 = vadd.f32 %v677_v57, %v676_v52 }
 0x2eb   :  { %v697_v60 = vrot.slane %v689_v58, %v696_v53  ;;  %v690_v61 = vcombine.low %v678_v59, %v684_v55 }
 0x2ed   :  { %v704_v62 = vrot.slane %v690_v61, %v696_v53 }
 0x2ef   :  { %v705_v63 = vcombine.low %v697_v60, %v704_v62 }
 0x2f1   :  { %v712_v0 = vrot.slane %v705_v63, %v696_v53 }
 0x2f3   :  { %718 = vst.msk [vmem:[%s1653_s5] sm:$0xf] %vm716_vm15, %v712_v0 }
 0x36e   :  { %v722_v1 = vpop.xlane.xlu0 %721 }
 0x36f   :  { %v723_v2 = vrot.slane %v722_v1, 4 }
 0x371   :  { %v724_v4 = vadd.f32 %v723_v2, %v722_v1 }
 0x373   :  { %v725_v5 = vrot.slane %v724_v4, 2 }
 0x375   :  { %v726_v6 = vadd.f32 %v725_v5, %v724_v4 }
 0x377   :  { %v727_v8 = vrot.slane %v726_v6, 1 }
 0x379   :  { %v728_v9 = vadd.f32 %v727_v8, %v726_v6 }
 0x37b   :  { %1141 = vpush %v728_v9 }
 0x3ac   :  { %s1142_s9 = spop %1141 }
 0x3ad   :  { %v730_v10 = vstv %s1142_s9 }
 0x3ae   :  { %732 = vst.msk [vmem:[#allocation4] sm:$0x1] %vm731_vm1, %v730_v10 }
 0x3af   :  { %1159 = shalt.err (!%p1156_p4)
}
 0x3b0   :  { %s1160_s13 = scalar_lea.hbm %s1654_s6, 16 }
 0x3b1   :  { %p1161_p5 = scmp.ne.s32.totalorder %s1654_s6, %s1160_s13  ;;  %p1164_p6 = scmp.lt.u32.totalorder %s1160_s13, %s1654_s6 }
 0x3b3   :  { %p1166_p7 = pnand %p1164_p6, %p1161_p5 }
 0x3b5   :  { %1169 = shalt.err (!%p1166_p7)
}
 0x3b6   :  { %756 = dma.vmem_to_hbm [thread:$0]  %s754_s8, 16, %s1654_s6, [#allocation5]   ;;  %v943_v3 = vpop.f32.mrb[2].mxu0  ;;  %v978_v13 = vpop.f32.mrb[2].mxu1 }
 0x3b7   :  { %v944_v14 = vpop.f32.mrb[3].mxu0  ;;  %v979_v15 = vpop.f32.mrb[3].mxu1  ;;  %s1200_s19 = smov [#allocation2]  }
 0x3b8   :  { %s739_s20 = sshll.u32 %s1200_s19, 4  ;;  %v945_v17 = vadd.f32 %v944_v14, %v943_v3  ;;  %v980_v19 = vadd.f32 %v979_v15, %v978_v13  ;;  %s740_s20 = int_to_ptr.vmem [resolvable:$true] %s739_s20 }
 0x3b9   :  { %s1170_s21 = scalar_lea.vmem %s740_s20, 128  ;;  %p1175_p9 = scmp.lt.s32.totalorder %s740_s20, %s740_s20 }
 0x3ba   :  { %v636_v20 = vadd.f32 %v980_v19, %v945_v17  ;;  %p1171_p8 = scmp.ne.s32.totalorder %s740_s20, %s1170_s21  ;;  %p1176_p10 = scmp.lt.s32.totalorder %s1170_s21, %s1170_s21 }
 0x3bc   :  { %654 = vst.msk [vmem:[#allocation2] sm:$0xff] %vm86_vm0, %v636_v20  ;;  %p1177_p11 = por %p1176_p10, %p1175_p9 }
 0x3be   :  { %p1178_p12 = pnand %p1177_p11, %p1171_p8 }
 0x3c0   :  { %1181 = shalt.err (!%p1178_p12)
}
 0x3c1   :  { %s1182_s23 = scalar_lea.hbm %s1651_s3, 128 }
 0x3c2   :  { %p1183_p13 = scmp.ne.s32.totalorder %s1651_s3, %s1182_s23  ;;  %p1186_p0 = scmp.lt.u32.totalorder %s1182_s23, %s1651_s3 }
 0x3c4   :  { %p1188_p1 = pnand %p1186_p0, %p1183_p13 }
 0x3c6   :  { %1191 = shalt.err (!%p1188_p1)
}
 0x3c7   :  { %742 = dma.vmem_to_hbm [thread:$0]  %s740_s20, 128, %s1651_s3, [#allocation3]  }
 0x3c8   :  { %1192 = dma.done.wait [#allocation3], 128  }
 0x3c9   :  { %1193 = vsyncadd [#allocation3], 4294967168 }
 0x3ca   :  { %1194 = dma.done.wait [#allocation5], 16  }
 0x3cb   :  { %1195 = vsyncadd [#allocation5], 4294967280 }
 0x3cc   :  { %767 = vsyncpa [#allocation3], 1 }
 0x3cd   :  { %768 = vsyncpa [#allocation5], 1 }

</bundles_post_ra>
